<compile_context>
chip_gen: v7x
topology: tpu7x:2x2x1
jax: 0.10.0
libtpu: 0.0.40
codegen_flags: <defaults>
</compile_context>

<pallas_src>
import functools

import jax
import jax.numpy as jnp
from jax.experimental import pallas as pl
from jax.experimental.pallas import tpu as pltpu

_EPS_PAIRWISE = 1e-6      # eps used inside nn.TripletMarginLoss (F.pairwise_distance)
_MASKED_MEAN_EPS = 1e-8


def _round_up(x, m):
    return ((x + m - 1) // m) * m


def _cdiv(a, b):
    return -(-a // b)


def _vmem_budget():
    """Return (double-buffered I/O data budget, scoped VMEM limit) in bytes."""
    try:
        info = pltpu.get_tpu_info()
        phys = int(getattr(info, "vmem_capacity_bytes", 64 * 1024 * 1024))
    except Exception:
        phys = 64 * 1024 * 1024      # conservative: assume v7x (64 MiB / TensorCore)
    data_budget = min(phys // 4, 24 * 1024 * 1024)
    vmem_limit = min((phys * 3) // 4, 2 * data_budget + (16 << 20))
    return data_budget, vmem_limit


def _pick_batch_tile(batch, feat, data_budget):
    """Largest batch tile (multiple of 8) whose double-buffered blocks fit the budget."""
    d_pad = _round_up(max(feat, 1), 128)
    # Per batch row, double-buffered: 3 f32 input rows (lanes padded to a
    # multiple of 128) + 3 f32 per-row outputs whose (tb, 1) blocks pad lanes to 128.
    bytes_per_row = 2 * 4 * 3 * (d_pad + 128)
    tb = (data_budget // bytes_per_row) // 8 * 8
    tb = int(max(8, min(tb, 8192)))
    tb = min(tb, _round_up(batch, 8))
    # Megacore (v7x): keep >= 2 parallel grid steps when there is enough work.
    if batch > 8 and _cdiv(batch, tb) < 2:
        tb = max(8, _round_up(_cdiv(batch, 2), 8))
    # Prefer a tile that divides the batch exactly (avoids a wrapper-side padding
    # copy of the inputs); don't shrink below ~half of the budgeted tile for it.
    for cand in range(tb, max(8, tb // 2) - 1, -8):
        if batch % cand == 0:
            return cand
    return tb


# ----------------------------------------------------------------------------
# Kernel 1: per-sample L2 distances and un-reduced triplet-margin loss.
# Memory-bound single pass over the three (tb, D) input tiles.
# ----------------------------------------------------------------------------
def _dist_loss_kernel(a_ref, p_ref, n_ref, dap_ref, dan_ref, loss_ref, *,
                      margin, feat_dim):
    a = a_ref[...].astype(jnp.float32)
    p = p_ref[...].astype(jnp.float32)
    n = n_ref[...].astype(jnp.float32)

    d_ap = a - p
    d_an = a - n

    s1_ap = jnp.sum(d_ap, axis=1, keepdims=True)
    s2_ap = jnp.sum(d_ap * d_ap, axis=1, keepdims=True)
    s1_an = jnp.sum(d_an, axis=1, keepdims=True)
    s2_an = jnp.sum(d_an * d_an, axis=1, keepdims=True)

    # torch.norm(anchor - positive, p=2, dim=1)
    dap_ref[...] = jnp.sqrt(s2_ap)
    dan_ref[...] = jnp.sqrt(s2_an)

    # nn.TripletMarginLoss -> F.pairwise_distance adds eps to the diff:
    #   ||d + eps||^2 = sum(d^2) + 2*eps*sum(d) + D*eps^2
    eps2 = float(feat_dim) * _EPS_PAIRWISE * _EPS_PAIRWISE
    d_ap_e = jnp.sqrt(jnp.maximum(s2_ap + 2.0 * _EPS_PAIRWISE * s1_ap + eps2, 0.0))
    d_an_e = jnp.sqrt(jnp.maximum(s2_an + 2.0 * _EPS_PAIRWISE * s1_an + eps2, 0.0))
    loss_ref[...] = jnp.maximum(d_ap_e - d_an_e + margin, 0.0)


# ----------------------------------------------------------------------------
# Kernel 2: tail-suppression masking + masked-mean reduction over the batch.
# Gridded over batch tiles; (1, 1) outputs stay VMEM-resident as accumulators
# (constant out index_map), init at step 0 and finalized at the last step.
# Thresholds arrive as scalars in SMEM.  Rows >= batch (wrapper padding) are
# masked out by index.
# ----------------------------------------------------------------------------
def _suppress_reduce_kernel(thr_ref, dap_ref, dan_ref, loss_ref,
                            mean_ref, pos_ref, neg_ref, trip_ref, *,
                            batch, tile):
    i = pl.program_id(0)

    @pl.when(i == 0)
    def _():
        mean_ref[...] = jnp.zeros_like(mean_ref)
        pos_ref[...] = jnp.zeros_like(pos_ref)
        neg_ref[...] = jnp.zeros_like(neg_ref)
        trip_ref[...] = jnp.zeros_like(trip_ref)

    pos_t = thr_ref[0]
    neg_t = thr_ref[1]

    dap = dap_ref[...]          # (tile, 1)
    dan = dan_ref[...]          # (tile, 1)
    row = i * tile + jax.lax.broadcasted_iota(jnp.int32, dap.shape, 0)
    valid_row = row < batch

    vp_b = valid_row & (dap >= pos_t)
    vn_b = valid_row & (dan <= neg_t)
    vt_b = vp_b & vn_b

    vp = jnp.where(vp_b, 1.0, 0.0)
    vn = jnp.where(vn_b, 1.0, 0.0)
    vt = jnp.where(vt_b, 1.0, 0.0)
    suppressed = jnp.where(vt_b, loss_ref[...], 0.0)

    # Accumulate; mean_ref holds the suppressed-loss *sum* until the last step.
    mean_ref[...] += jnp.sum(suppressed, keepdims=True)
    pos_ref[...] += jnp.sum(vp, keepdims=True)
    neg_ref[...] += jnp.sum(vn, keepdims=True)
    trip_ref[...] += jnp.sum(vt, keepdims=True)

    @pl.when(i == pl.num_programs(0) - 1)
    def _():
        mean_ref[...] = mean_ref[...] / (trip_ref[...] + _MASKED_MEAN_EPS)


def _forward_impl(anchor, positive, negative, *, margin, pct_p, pct_n):
    B, D = anchor.shape
    data_budget, vmem_limit = _vmem_budget()
    tb = _pick_batch_tile(B, D, data_budget)
    grid1 = _cdiv(B, tb)
    Bp = grid1 * tb
    if Bp != B:
        # Fallback for batch sizes with no suitable divisor: pad with zero rows
        # (they are sliced off before the quantile and masked out in kernel 2).
        pad = ((0, Bp - B), (0, 0))
        anchor = jnp.pad(anchor, pad)
        positive = jnp.pad(positive, pad)
        negative = jnp.pad(negative, pad)

    dist_fn = pl.pallas_call(
        functools.partial(_dist_loss_kernel, margin=margin, feat_dim=D),
        out_shape=(jax.ShapeDtypeStruct((Bp, 1), jnp.float32),) * 3,
        grid=(grid1,),
        in_specs=[pl.BlockSpec((tb, D), lambda i: (i, 0))] * 3,
        out_specs=(pl.BlockSpec((tb, 1), lambda i: (i, 0)),) * 3,
        compiler_params=pltpu.CompilerParams(
            dimension_semantics=("parallel",),
            vmem_limit_bytes=vmem_limit),
    )
    dap_col, dan_col, loss_col = dist_fn(anchor, positive, negative)

    dist_ap = dap_col[:B, 0]
    dist_an = dan_col[:B, 0]

    # TODO(synk): torch.quantile needs a global sort over the batch; there is no
    # clean Pallas TPU primitive for that, so quantiles stay in plain JAX
    # (linear interpolation == torch default).
    pos_threshold = jnp.quantile(dist_ap, pct_p)
    neg_threshold = jnp.quantile(dist_an, pct_n)
    thresholds = jnp.stack([pos_threshold, neg_threshold]).astype(jnp.float32)

    reduce_fn = pl.pallas_call(
        functools.partial(_suppress_reduce_kernel, batch=B, tile=tb),
        out_shape=(jax.ShapeDtypeStruct((1, 1), jnp.float32),) * 4,
        grid=(grid1,),
        in_specs=[
            pl.BlockSpec(memory_space=pltpu.MemorySpace.SMEM),
            pl.BlockSpec((tb, 1), lambda i: (i, 0)),
            pl.BlockSpec((tb, 1), lambda i: (i, 0)),
            pl.BlockSpec((tb, 1), lambda i: (i, 0)),
        ],
        out_specs=(pl.BlockSpec((1, 1), lambda i: (0, 0)),) * 4,
        compiler_params=pltpu.CompilerParams(
            dimension_semantics=("arbitrary",),
            vmem_limit_bytes=vmem_limit),
    )
    loss_mean, pos_cnt, neg_cnt, trip_cnt = reduce_fn(
        thresholds, dap_col, dan_col, loss_col)

    return (loss_mean[0, 0],
            pos_cnt[0, 0].astype(jnp.int32),
            neg_cnt[0, 0].astype(jnp.int32),
            trip_cnt[0, 0].astype(jnp.int32),
            dist_ap, dist_an,
            pos_threshold, neg_threshold)


class TailSuppressedTripletMarginLoss:
    """JAX/Pallas port of the PyTorch module (no trainable params)."""

    def __init__(self, output_feature_dim, margin=1.0, pct_p=0.01, pct_n=0.05):
        self.feature_dim = output_feature_dim
        self.margin = float(margin)
        self.pct_p = float(pct_p)
        self.pct_n = float(pct_n)
        # jit once per instance so both pallas_calls + the quantile sort compile
        # into a single program and are not re-traced every training step.
        self._forward = jax.jit(functools.partial(
            _forward_impl, margin=self.margin, pct_p=self.pct_p, pct_n=self.pct_n))

    def __call__(self, anchor, positive, negative, epoch=0):
        B = anchor.shape[0]
        (loss_mean, pos_cnt, neg_cnt, trip_cnt,
         dist_ap, dist_an, pos_thr, neg_thr) = self._forward(
            anchor, positive, negative)
        # TODO(synk): the PyTorch module calls .item() + logger.info here; host
        # sync/logging is intentionally omitted from the traced path.
        return (loss_mean, pos_cnt, neg_cnt, trip_cnt, B,
                dist_ap, dist_an, pos_thr, neg_thr)


def _reference(anchor, positive, negative, margin, pct_p, pct_n):
    dist_ap = jnp.sqrt(jnp.sum((anchor - positive) ** 2, axis=1))
    dist_an = jnp.sqrt(jnp.sum((anchor - negative) ** 2, axis=1))
    pos_t = jnp.quantile(dist_ap, pct_p)
    neg_t = jnp.quantile(dist_an, pct_n)
    vp = dist_ap >= pos_t
    vn = dist_an <= neg_t
    vt = vp & vn
    d_ap_e = jnp.sqrt(jnp.sum((anchor - positive + _EPS_PAIRWISE) ** 2, axis=1))
    d_an_e = jnp.sqrt(jnp.sum((anchor - negative + _EPS_PAIRWISE) ** 2, axis=1))
    losses = jnp.maximum(d_ap_e - d_an_e + margin, 0.0)
    sup = losses * vt.astype(jnp.float32)
    loss_mean = sup.sum() / (vt.sum() + _MASKED_MEAN_EPS)
    return (loss_mean, vp.sum(), vn.sum(), vt.sum(), dist_ap, dist_an, pos_t, neg_t)


if __name__ == "__main__":
    B, D = 16, 32  # small shapes consistent with (batch, output_feature_dim)
    key = jax.random.PRNGKey(0)
    ka, kp, kn = jax.random.split(key, 3)
    anchor = jax.random.normal(ka, (B, D), dtype=jnp.float32)
    positive = jax.random.normal(kp, (B, D), dtype=jnp.float32)
    negative = jax.random.normal(kn, (B, D), dtype=jnp.float32)

    loss_mod = TailSuppressedTripletMarginLoss(
        output_feature_dim=D, margin=1.0, pct_p=0.01, pct_n=0.05)

    out = loss_mod(anchor, positive, negative, epoch=0)
    out = jax.block_until_ready(out)
    (loss_mean, pos_cnt, neg_cnt, trip_cnt, total,
     dist_ap, dist_an, pos_thr, neg_thr) = out

    # Cross-check against a pure-JAX reference of the PyTorch semantics.
    (r_loss, r_pos, r_neg, r_trip, r_dap, r_dan, r_pt, r_nt) = _reference(
        anchor, positive, negative, 1.0, 0.01, 0.05)

    assert jnp.allclose(dist_ap, r_dap, rtol=1e-5, atol=1e-5)
    assert jnp.allclose(dist_an, r_dan, rtol=1e-5, atol=1e-5)
    assert jnp.allclose(pos_thr, r_pt, rtol=1e-5, atol=1e-5)
    assert jnp.allclose(neg_thr, r_nt, rtol=1e-5, atol=1e-5)
    assert int(pos_cnt) == int(r_pos)
    assert int(neg_cnt) == int(r_neg)
    assert int(trip_cnt) == int(r_trip)
    assert jnp.allclose(loss_mean, r_loss, rtol=1e-5, atol=1e-5)
    assert total == B

    print("KERNEL_OK")
</pallas_src>

<mosaic_0001>
module attributes {stable_mosaic.version = 11 : i64} {
  func.func @_dist_loss_kernel(%arg0: i32, %arg1: memref<8x32xf32, #tpu.memory_space<vmem>>, %arg2: memref<8x32xf32, #tpu.memory_space<vmem>>, %arg3: memref<8x32xf32, #tpu.memory_space<vmem>>, %arg4: memref<8x1xf32, #tpu.memory_space<vmem>>, %arg5: memref<8x1xf32, #tpu.memory_space<vmem>>, %arg6: memref<8x1xf32, #tpu.memory_space<vmem>>) attributes {dimension_semantics = [#tpu.dimension_semantics<parallel>], iteration_bounds = array<i64: 2>, scalar_prefetch = 0 : i64, scratch_operands = 0 : i64, tpu.core_type = #tpu.core_type<tc>, window_params = [{transform_indices = @transform_0, window_bounds = array<i64: 8, 32>}, {transform_indices = @transform_1, window_bounds = array<i64: 8, 32>}, {transform_indices = @transform_2, window_bounds = array<i64: 8, 32>}, {transform_indices = @transform_3, window_bounds = array<i64: 8, 1>}, {transform_indices = @transform_4, window_bounds = array<i64: 8, 1>}, {transform_indices = @transform_5, window_bounds = array<i64: 8, 1>}]} {
    %c0 = arith.constant 0 : index
    %c0_0 = arith.constant 0 : index
    %0 = vector.load %arg1[%c0, %c0_0] : memref<8x32xf32, #tpu.memory_space<vmem>>, vector<8x32xf32>
    %c0_1 = arith.constant 0 : index
    %c0_2 = arith.constant 0 : index
    %1 = vector.load %arg2[%c0_1, %c0_2] : memref<8x32xf32, #tpu.memory_space<vmem>>, vector<8x32xf32>
    %c0_3 = arith.constant 0 : index
    %c0_4 = arith.constant 0 : index
    %2 = vector.load %arg3[%c0_3, %c0_4] : memref<8x32xf32, #tpu.memory_space<vmem>>, vector<8x32xf32>
    %3 = arith.subf %0, %1 : vector<8x32xf32>
    %4 = arith.subf %0, %2 : vector<8x32xf32>
    %cst = arith.constant dense<0.000000e+00> : vector<8xf32>
    %5 = vector.multi_reduction <add>, %3, %cst [1] : vector<8x32xf32> to vector<8xf32>
    %6 = vector.shape_cast %5 : vector<8xf32> to vector<8x1xf32>
    %7 = arith.mulf %3, %3 : vector<8x32xf32>
    %cst_5 = arith.constant dense<0.000000e+00> : vector<8xf32>
    %8 = vector.multi_reduction <add>, %7, %cst_5 [1] : vector<8x32xf32> to vector<8xf32>
    %9 = vector.shape_cast %8 : vector<8xf32> to vector<8x1xf32>
    %cst_6 = arith.constant dense<0.000000e+00> : vector<8xf32>
    %10 = vector.multi_reduction <add>, %4, %cst_6 [1] : vector<8x32xf32> to vector<8xf32>
    %11 = vector.shape_cast %10 : vector<8xf32> to vector<8x1xf32>
    %12 = arith.mulf %4, %4 : vector<8x32xf32>
    %cst_7 = arith.constant dense<0.000000e+00> : vector<8xf32>
    %13 = vector.multi_reduction <add>, %12, %cst_7 [1] : vector<8x32xf32> to vector<8xf32>
    %14 = vector.shape_cast %13 : vector<8xf32> to vector<8x1xf32>
    %15 = math.sqrt %9 : vector<8x1xf32>
    %c0_8 = arith.constant 0 : index
    %c0_9 = arith.constant 0 : index
    %16 = vector.load %arg4[%c0_8, %c0_9] : memref<8x1xf32, #tpu.memory_space<vmem>>, vector<8x1xf32>
    tpu.vector_store %arg4[%c0_8, %c0_9], %15 {strides = array<i32>} : memref<8x1xf32, #tpu.memory_space<vmem>>, vector<8x1xf32>,
    %17 = math.sqrt %14 : vector<8x1xf32>
    %c0_10 = arith.constant 0 : index
    %c0_11 = arith.constant 0 : index
    %18 = vector.load %arg5[%c0_10, %c0_11] : memref<8x1xf32, #tpu.memory_space<vmem>>, vector<8x1xf32>
    tpu.vector_store %arg5[%c0_10, %c0_11], %17 {strides = array<i32>} : memref<8x1xf32, #tpu.memory_space<vmem>>, vector<8x1xf32>,
    %cst_12 = arith.constant 2.000000e-06 : f32
    %19 = vector.broadcast %cst_12 : f32 to vector<8x1xf32>
    %20 = arith.mulf %19, %6 : vector<8x1xf32>
    %21 = arith.addf %9, %20 : vector<8x1xf32>
    %cst_13 = arith.constant 3.200000e-11 : f32
    %22 = vector.broadcast %cst_13 : f32 to vector<8x1xf32>
    %23 = arith.addf %21, %22 : vector<8x1xf32>
    %cst_14 = arith.constant 0.000000e+00 : f32
    %24 = vector.broadcast %cst_14 : f32 to vector<8x1xf32>
    %25 = arith.maximumf %23, %24 : vector<8x1xf32>
    %26 = math.sqrt %25 : vector<8x1xf32>
    %cst_15 = arith.constant 2.000000e-06 : f32
    %27 = vector.broadcast %cst_15 : f32 to vector<8x1xf32>
    %28 = arith.mulf %27, %11 : vector<8x1xf32>
    %29 = arith.addf %14, %28 : vector<8x1xf32>
    %cst_16 = arith.constant 3.200000e-11 : f32
    %30 = vector.broadcast %cst_16 : f32 to vector<8x1xf32>
    %31 = arith.addf %29, %30 : vector<8x1xf32>
    %cst_17 = arith.constant 0.000000e+00 : f32
    %32 = vector.broadcast %cst_17 : f32 to vector<8x1xf32>
    %33 = arith.maximumf %31, %32 : vector<8x1xf32>
    %34 = math.sqrt %33 : vector<8x1xf32>
    %35 = arith.subf %26, %34 : vector<8x1xf32>
    %cst_18 = arith.constant 1.000000e+00 : f32
    %36 = vector.broadcast %cst_18 : f32 to vector<8x1xf32>
    %37 = arith.addf %35, %36 : vector<8x1xf32>
    %cst_19 = arith.constant 0.000000e+00 : f32
    %38 = vector.broadcast %cst_19 : f32 to vector<8x1xf32>
    %39 = arith.maximumf %37, %38 : vector<8x1xf32>
    %c0_20 = arith.constant 0 : index
    %c0_21 = arith.constant 0 : index
    %40 = vector.load %arg6[%c0_20, %c0_21] : memref<8x1xf32, #tpu.memory_space<vmem>>, vector<8x1xf32>
    tpu.vector_store %arg6[%c0_20, %c0_21], %39 {strides = array<i32>} : memref<8x1xf32, #tpu.memory_space<vmem>>, vector<8x1xf32>,
    return
  }
  func.func @transform_0(%arg0: i32) -> (i32, i32) {
    %c0_i32 = arith.constant 0 : i32
    %c0_i32_0 = arith.constant 0 : i32
    return %arg0, %c0_i32 : i32, i32
  }
  func.func @transform_1(%arg0: i32) -> (i32, i32) {
    %c0_i32 = arith.constant 0 : i32
    %c0_i32_0 = arith.constant 0 : i32
    return %arg0, %c0_i32 : i32, i32
  }
  func.func @transform_2(%arg0: i32) -> (i32, i32) {
    %c0_i32 = arith.constant 0 : i32
    %c0_i32_0 = arith.constant 0 : i32
    return %arg0, %c0_i32 : i32, i32
  }
  func.func @transform_3(%arg0: i32) -> (i32, i32) {
    %c0_i32 = arith.constant 0 : i32
    %c0_i32_0 = arith.constant 0 : i32
    return %arg0, %c0_i32 : i32, i32
  }
  func.func @transform_4(%arg0: i32) -> (i32, i32) {
    %c0_i32 = arith.constant 0 : i32
    %c0_i32_0 = arith.constant 0 : i32
    return %arg0, %c0_i32 : i32, i32
  }
  func.func @transform_5(%arg0: i32) -> (i32, i32) {
    %c0_i32 = arith.constant 0 : i32
    %c0_i32_0 = arith.constant 0 : i32
    return %arg0, %c0_i32 : i32, i32
  }
}

module attributes {stable_mosaic.version = 11 : i64} {
  func.func @_suppress_reduce_kernel(%arg0: i32, %arg1: memref<2xf32, #tpu.memory_space<smem>>, %arg2: memref<8x1xf32, #tpu.memory_space<vmem>>, %arg3: memref<8x1xf32, #tpu.memory_space<vmem>>, %arg4: memref<8x1xf32, #tpu.memory_space<vmem>>, %arg5: memref<1x1xf32, #tpu.memory_space<vmem>>, %arg6: memref<1x1xf32, #tpu.memory_space<vmem>>, %arg7: memref<1x1xf32, #tpu.memory_space<vmem>>, %arg8: memref<1x1xf32, #tpu.memory_space<vmem>>) attributes {dimension_semantics = [#tpu.dimension_semantics<arbitrary>], iteration_bounds = array<i64: 2>, scalar_prefetch = 0 : i64, scratch_operands = 0 : i64, tpu.core_type = #tpu.core_type<tc>, window_params = [{transform_indices = @transform_0, window_bounds = array<i64: 2>}, {transform_indices = @transform_1, window_bounds = array<i64: 8, 1>}, {transform_indices = @transform_2, window_bounds = array<i64: 8, 1>}, {transform_indices = @transform_3, window_bounds = array<i64: 8, 1>}, {pipeline_mode = #tpu.pipeline_mode<synchronous>, transform_indices = @transform_4, window_bounds = array<i64: 1, 1>}, {pipeline_mode = #tpu.pipeline_mode<synchronous>, transform_indices = @transform_5, window_bounds = array<i64: 1, 1>}, {pipeline_mode = #tpu.pipeline_mode<synchronous>, transform_indices = @transform_6, window_bounds = array<i64: 1, 1>}, {pipeline_mode = #tpu.pipeline_mode<synchronous>, transform_indices = @transform_7, window_bounds = array<i64: 1, 1>}]} {
    %c0_i32 = arith.constant 0 : i32
    %0 = arith.cmpi eq, %arg0, %c0_i32 : i32
    %1 = arith.extui %0 : i1 to i32
    %c0_i32_0 = arith.constant 0 : i32
    %2 = arith.cmpi ne, %1, %c0_i32_0 : i32
    scf.if %2 {
      %cst_34 = arith.constant 0.000000e+00 : f32
      %67 = vector.broadcast %cst_34 : f32 to vector<1x1xf32>
      %c0_35 = arith.constant 0 : index
      %c0_36 = arith.constant 0 : index
      %68 = vector.load %arg5[%c0_35, %c0_36] : memref<1x1xf32, #tpu.memory_space<vmem>>, vector<1x1xf32>
      tpu.vector_store %arg5[%c0_35, %c0_36], %67 {strides = array<i32>} : memref<1x1xf32, #tpu.memory_space<vmem>>, vector<1x1xf32>,
      %cst_37 = arith.constant 0.000000e+00 : f32
      %69 = vector.broadcast %cst_37 : f32 to vector<1x1xf32>
      %c0_38 = arith.constant 0 : index
      %c0_39 = arith.constant 0 : index
      %70 = vector.load %arg6[%c0_38, %c0_39] : memref<1x1xf32, #tpu.memory_space<vmem>>, vector<1x1xf32>
      tpu.vector_store %arg6[%c0_38, %c0_39], %69 {strides = array<i32>} : memref<1x1xf32, #tpu.memory_space<vmem>>, vector<1x1xf32>,
      %cst_40 = arith.constant 0.000000e+00 : f32
      %71 = vector.broadcast %cst_40 : f32 to vector<1x1xf32>
      %c0_41 = arith.constant 0 : index
      %c0_42 = arith.constant 0 : index
      %72 = vector.load %arg7[%c0_41, %c0_42] : memref<1x1xf32, #tpu.memory_space<vmem>>, vector<1x1xf32>
      tpu.vector_store %arg7[%c0_41, %c0_42], %71 {strides = array<i32>} : memref<1x1xf32, #tpu.memory_space<vmem>>, vector<1x1xf32>,
      %cst_43 = arith.constant 0.000000e+00 : f32
      %73 = vector.broadcast %cst_43 : f32 to vector<1x1xf32>
      %c0_44 = arith.constant 0 : index
      %c0_45 = arith.constant 0 : index
      %74 = vector.load %arg8[%c0_44, %c0_45] : memref<1x1xf32, #tpu.memory_space<vmem>>, vector<1x1xf32>
      tpu.vector_store %arg8[%c0_44, %c0_45], %73 {strides = array<i32>} : memref<1x1xf32, #tpu.memory_space<vmem>>, vector<1x1xf32>,
    } else {
    }
    %c0 = arith.constant 0 : index
    %3 = memref.load %arg1[%c0] : memref<2xf32, #tpu.memory_space<smem>>
    %c1 = arith.constant 1 : index
    %4 = memref.load %arg1[%c1] : memref<2xf32, #tpu.memory_space<smem>>
    %c0_1 = arith.constant 0 : index
    %c0_2 = arith.constant 0 : index
    %5 = vector.load %arg2[%c0_1, %c0_2] : memref<8x1xf32, #tpu.memory_space<vmem>>, vector<8x1xf32>
    %c0_3 = arith.constant 0 : index
    %c0_4 = arith.constant 0 : index
    %6 = vector.load %arg3[%c0_3, %c0_4] : memref<8x1xf32, #tpu.memory_space<vmem>>, vector<8x1xf32>
    %c8_i32 = arith.constant 8 : i32
    %7 = arith.muli %arg0, %c8_i32 : i32
    %8 = tpu.iota {dimensions = array<i32: 0>} : vector<8x1xi32>
    %9 = vector.broadcast %7 : i32 to vector<8x1xi32>
    %10 = arith.addi %9, %8 : vector<8x1xi32>
    %c16_i32 = arith.constant 16 : i32
    %11 = vector.broadcast %c16_i32 : i32 to vector<8x1xi32>
    %12 = arith.cmpi slt, %10, %11 : vector<8x1xi32>
    %13 = vector.broadcast %3 : f32 to vector<8x1xf32>
    %14 = arith.cmpf oge, %5, %13 : vector<8x1xf32>
    %15 = arith.andi %12, %14 : vector<8x1xi1>
    %16 = vector.broadcast %4 : f32 to vector<8x1xf32>
    %17 = arith.cmpf ole, %6, %16 : vector<8x1xf32>
    %18 = arith.andi %12, %17 : vector<8x1xi1>
    %19 = arith.andi %15, %18 : vector<8x1xi1>
    %cst = arith.constant 1.000000e+00 : f32
    %cst_5 = arith.constant 0.000000e+00 : f32
    %20 = vector.broadcast %cst : f32 to vector<8x1xf32>
    %21 = vector.broadcast %cst_5 : f32 to vector<8x1xf32>
    %22 = arith.select %15, %20, %21 : vector<8x1xi1>, vector<8x1xf32>
    %cst_6 = arith.constant 1.000000e+00 : f32
    %cst_7 = arith.constant 0.000000e+00 : f32
    %23 = vector.broadcast %cst_6 : f32 to vector<8x1xf32>
    %24 = vector.broadcast %cst_7 : f32 to vector<8x1xf32>
    %25 = arith.select %18, %23, %24 : vector<8x1xi1>, vector<8x1xf32>
    %cst_8 = arith.constant 1.000000e+00 : f32
    %cst_9 = arith.constant 0.000000e+00 : f32
    %26 = vector.broadcast %cst_8 : f32 to vector<8x1xf32>
    %27 = vector.broadcast %cst_9 : f32 to vector<8x1xf32>
    %28 = arith.select %19, %26, %27 : vector<8x1xi1>, vector<8x1xf32>
    %c0_10 = arith.constant 0 : index
    %c0_11 = arith.constant 0 : index
    %29 = vector.load %arg4[%c0_10, %c0_11] : memref<8x1xf32, #tpu.memory_space<vmem>>, vector<8x1xf32>
    %cst_12 = arith.constant 0.000000e+00 : f32
    %30 = vector.broadcast %cst_12 : f32 to vector<8x1xf32>
    %31 = arith.select %19, %29, %30 : vector<8x1xi1>, vector<8x1xf32>
    %c0_13 = arith.constant 0 : index
    %c0_14 = arith.constant 0 : index
    %32 = vector.load %arg5[%c0_13, %c0_14] : memref<1x1xf32, #tpu.memory_space<vmem>>, vector<1x1xf32>
    %33 = vector.shape_cast %31 : vector<8x1xf32> to vector<1x8x1xf32>
    %cst_15 = arith.constant dense<0.000000e+00> : vector<1xf32>
    %34 = vector.multi_reduction <add>, %33, %cst_15 [1, 2] : vector<1x8x1xf32> to vector<1xf32>
    %35 = vector.shape_cast %34 : vector<1xf32> to vector<1x1x1xf32>
    %36 = vector.extract %35[0, 0, 0] : f32 from vector<1x1x1xf32>
    %37 = vector.broadcast %36 : f32 to vector<1x1xf32>
    %38 = arith.addf %32, %37 : vector<1x1xf32>
    %c0_16 = arith.constant 0 : index
    %c0_17 = arith.constant 0 : index
    %39 = vector.load %arg5[%c0_16, %c0_17] : memref<1x1xf32, #tpu.memory_space<vmem>>, vector<1x1xf32>
    tpu.vector_store %arg5[%c0_16, %c0_17], %38 {strides = array<i32>} : memref<1x1xf32, #tpu.memory_space<vmem>>, vector<1x1xf32>,
    %c0_18 = arith.constant 0 : index
    %c0_19 = arith.constant 0 : index
    %40 = vector.load %arg6[%c0_18, %c0_19] : memref<1x1xf32, #tpu.memory_space<vmem>>, vector<1x1xf32>
    %41 = vector.shape_cast %22 : vector<8x1xf32> to vector<1x8x1xf32>
    %cst_20 = arith.constant dense<0.000000e+00> : vector<1xf32>
    %42 = vector.multi_reduction <add>, %41, %cst_20 [1, 2] : vector<1x8x1xf32> to vector<1xf32>
    %43 = vector.shape_cast %42 : vector<1xf32> to vector<1x1x1xf32>
    %44 = vector.extract %43[0, 0, 0] : f32 from vector<1x1x1xf32>
    %45 = vector.broadcast %44 : f32 to vector<1x1xf32>
    %46 = arith.addf %40, %45 : vector<1x1xf32>
    %c0_21 = arith.constant 0 : index
    %c0_22 = arith.constant 0 : index
    %47 = vector.load %arg6[%c0_21, %c0_22] : memref<1x1xf32, #tpu.memory_space<vmem>>, vector<1x1xf32>
    tpu.vector_store %arg6[%c0_21, %c0_22], %46 {strides = array<i32>} : memref<1x1xf32, #tpu.memory_space<vmem>>, vector<1x1xf32>,
    %c0_23 = arith.constant 0 : index
    %c0_24 = arith.constant 0 : index
    %48 = vector.load %arg7[%c0_23, %c0_24] : memref<1x1xf32, #tpu.memory_space<vmem>>, vector<1x1xf32>
    %49 = vector.shape_cast %25 : vector<8x1xf32> to vector<1x8x1xf32>
    %cst_25 = arith.constant dense<0.000000e+00> : vector<1xf32>
    %50 = vector.multi_reduction <add>, %49, %cst_25 [1, 2] : vector<1x8x1xf32> to vector<1xf32>
    %51 = vector.shape_cast %50 : vector<1xf32> to vector<1x1x1xf32>
    %52 = vector.extract %51[0, 0, 0] : f32 from vector<1x1x1xf32>
    %53 = vector.broadcast %52 : f32 to vector<1x1xf32>
    %54 = arith.addf %48, %53 : vector<1x1xf32>
    %c0_26 = arith.constant 0 : index
    %c0_27 = arith.constant 0 : index
    %55 = vector.load %arg7[%c0_26, %c0_27] : memref<1x1xf32, #tpu.memory_space<vmem>>, vector<1x1xf32>
    tpu.vector_store %arg7[%c0_26, %c0_27], %54 {strides = array<i32>} : memref<1x1xf32, #tpu.memory_space<vmem>>, vector<1x1xf32>,
    %c0_28 = arith.constant 0 : index
    %c0_29 = arith.constant 0 : index
    %56 = vector.load %arg8[%c0_28, %c0_29] : memref<1x1xf32, #tpu.memory_space<vmem>>, vector<1x1xf32>
    %57 = vector.shape_cast %28 : vector<8x1xf32> to vector<1x8x1xf32>
    %cst_30 = arith.constant dense<0.000000e+00> : vector<1xf32>
    %58 = vector.multi_reduction <add>, %57, %cst_30 [1, 2] : vector<1x8x1xf32> to vector<1xf32>
    %59 = vector.shape_cast %58 : vector<1xf32> to vector<1x1x1xf32>
    %60 = vector.extract %59[0, 0, 0] : f32 from vector<1x1x1xf32>
    %61 = vector.broadcast %60 : f32 to vector<1x1xf32>
    %62 = arith.addf %56, %61 : vector<1x1xf32>
    %c0_31 = arith.constant 0 : index
    %c0_32 = arith.constant 0 : index
    %63 = vector.load %arg8[%c0_31, %c0_32] : memref<1x1xf32, #tpu.memory_space<vmem>>, vector<1x1xf32>
    tpu.vector_store %arg8[%c0_31, %c0_32], %62 {strides = array<i32>} : memref<1x1xf32, #tpu.memory_space<vmem>>, vector<1x1xf32>,
    %c1_i32 = arith.constant 1 : i32
    %64 = arith.cmpi eq, %arg0, %c1_i32 : i32
    %65 = arith.extui %64 : i1 to i32
    %c0_i32_33 = arith.constant 0 : i32
    %66 = arith.cmpi ne, %65, %c0_i32_33 : i32
    scf.if %66 {
      %c0_34 = arith.constant 0 : index
      %c0_35 = arith.constant 0 : index
      %67 = vector.load %arg5[%c0_34, %c0_35] : memref<1x1xf32, #tpu.memory_space<vmem>>, vector<1x1xf32>
      %c0_36 = arith.constant 0 : index
      %c0_37 = arith.constant 0 : index
      %68 = vector.load %arg8[%c0_36, %c0_37] : memref<1x1xf32, #tpu.memory_space<vmem>>, vector<1x1xf32>
      %cst_38 = arith.constant 9.99999993E-9 : f32
      %69 = vector.broadcast %cst_38 : f32 to vector<1x1xf32>
      %70 = arith.addf %68, %69 : vector<1x1xf32>
      %71 = arith.divf %67, %70 : vector<1x1xf32>
      %c0_39 = arith.constant 0 : index
      %c0_40 = arith.constant 0 : index
      %72 = vector.load %arg5[%c0_39, %c0_40] : memref<1x1xf32, #tpu.memory_space<vmem>>, vector<1x1xf32>
      tpu.vector_store %arg5[%c0_39, %c0_40], %71 {strides = array<i32>} : memref<1x1xf32, #tpu.memory_space<vmem>>, vector<1x1xf32>,
    } else {
    }
    return
  }
  func.func @transform_0(%arg0: i32) -> i32 {
    %c0_i32 = arith.constant 0 : i32
    %c0_i32_0 = arith.constant 0 : i32
    return %c0_i32 : i32
  }
  func.func @transform_1(%arg0: i32) -> (i32, i32) {
    %c0_i32 = arith.constant 0 : i32
    %c0_i32_0 = arith.constant 0 : i32
    return %arg0, %c0_i32 : i32, i32
  }
  func.func @transform_2(%arg0: i32) -> (i32, i32) {
    %c0_i32 = arith.constant 0 : i32
    %c0_i32_0 = arith.constant 0 : i32
    return %arg0, %c0_i32 : i32, i32
  }
  func.func @transform_3(%arg0: i32) -> (i32, i32) {
    %c0_i32 = arith.constant 0 : i32
    %c0_i32_0 = arith.constant 0 : i32
    return %arg0, %c0_i32 : i32, i32
  }
  func.func @transform_4(%arg0: i32) -> (i32, i32) {
    %c0_i32 = arith.constant 0 : i32
    %c0_i32_0 = arith.constant 0 : i32
    %c0_i32_1 = arith.constant 0 : i32
    return %c0_i32, %c0_i32_0 : i32, i32
  }
  func.func @transform_5(%arg0: i32) -> (i32, i32) {
    %c0_i32 = arith.constant 0 : i32
    %c0_i32_0 = arith.constant 0 : i32
    %c0_i32_1 = arith.constant 0 : i32
    return %c0_i32, %c0_i32_0 : i32, i32
  }
  func.func @transform_6(%arg0: i32) -> (i32, i32) {
    %c0_i32 = arith.constant 0 : i32
    %c0_i32_0 = arith.constant 0 : i32
    %c0_i32_1 = arith.constant 0 : i32
    return %c0_i32, %c0_i32_0 : i32, i32
  }
  func.func @transform_7(%arg0: i32) -> (i32, i32) {
    %c0_i32 = arith.constant 0 : i32
    %c0_i32_0 = arith.constant 0 : i32
    %c0_i32_1 = arith.constant 0 : i32
    return %c0_i32, %c0_i32_0 : i32, i32
  }
}

</mosaic_0001>

<bundles_post_ra>
// kernel: _forward_impl.2
= control target key start
LH: loop header
LB: loop body
LE: loop exit
PB: predicated region body
PF: predicated region fallthrough
CT: control target
= control target key end

     0   :  { %11 = vsyncpa [#allocation3], 0  ;;  %s1006_s0 = inlined_call_operand.hbm [shape: f32[16,32], index: 0, kind: input, shape index: {}]   ;;  %s1007_s1 = inlined_call_operand.hbm [shape: f32[16,32], index: 1, kind: input, shape index: {}]   ;;  %s1008_s2 = inlined_call_operand.hbm [shape: f32[16,32], index: 2, kind: input, shape index: {}]   ;;  %s1009_s3 = inlined_call_operand.vmem [shape: f32[16,1], index: 3, kind: output, shape index: {0}]   ;;  %s1010_s4 = inlined_call_operand.vmem [shape: f32[16,1], index: 4, kind: output, shape index: {1}]   ;;  %s1011_s5 = inlined_call_operand.vmem [shape: f32[16,1], index: 5, kind: output, shape index: {2}]  }
   0x1   :  { %13 = vsyncpa [#allocation3 + $0x1], 0 }
   0x2   :  { %14 = vsyncpa [#allocation5], 0 }
   0x3   :  { %16 = vsyncpa [#allocation5 + $0x1], 0  ;;  %s803_s18 = smov 0   ;;  %s805_s19 = smov 0  }
   0x4   :  { %s807_s20 = smov 0   ;;  %s809_s21 = smov 0  }
   0x5 LB: > { %s822_s22 = sadd.s32 4294967295, %s768_s21   ;;  %s825_s23 = sadd.s32 1, %s768_s21   ;;  %s768_s21 = sphi %s809_s21, %s1026_s21   ;;  %s764_s20 = sphi %s807_s20, %s1025_s20   ;;  %s760_s19 = sphi %s805_s19, %s1024_s19   ;;  %s756_s18 = sphi %s803_s18, %s1023_s18  }
   0x6   : > { %s26_s24 = ssub.s32 %s768_s21, %s825_s23  ;;  %s29_s25 = sadd.s32 1, %s764_s20 }
   0x7   : > { %p27_p0 = scmp.eq.s32.totalorder %s26_s24, 0  ;;  %p36_p1 = scmp.ne.s32.totalorder %s764_s20, %s760_s19 }
   0x8   : > { %p37_p2 = scmp.eq.s32.totalorder %s768_s21, 0  ;;  %p42_p3 = scmp.ne.s32.totalorder %s760_s19, %s756_s18 }
   0x9   : > { %s835_s26 = scalar_select %p27_p0, %s764_s20, %s29_s25  }
   0xa   : > { %p38_p4 = por %p37_p2, %p36_p1  ;;  %p43_p5 = scmp.eq.s32.totalorder %s822_s22, 0 }
   0xb   : > { %p599_p6 = scmp.lt.s32.totalorder %s768_s21, 2  ;;  %s196_s28 = sand.u32 1, %s764_s20  }
   0xc   : > { %p839_p7 = por %p43_p5, %p42_p3  ;;  %s846_s29 = sshll.u32 %s196_s28, 3 }
   0xd   : > { %s849_s30 = sshll.u32 %s768_s21, 7  ;;  %p851_p8 = pnand %p599_p6, %p38_p4 }
   0xe   : > { %s1014_s27 = scalar_select %p839_p7, 1, 0 }
   0xf   : > { %s1015_s6 = scalar_select %p851_p8, 1, 0 }
  0x10   : > { %s214_s7 = sand.u32 1, %s768_s21   ;;  %s860_s10 = scalar_lea.hbm %s1007_s1, %s849_s30 }
  0x11   : > { %s218_s11 = scalar_lea.vmem [#allocation4], %s846_s29  ;;  %s867_s13 = scalar_lea.sflag [#allocation5], %s214_s7 }
  0x12   : > { %s225_s12 = sshll.u32 %s218_s11, 4  ;;  %s640_s14 = scalar_lea.hbm %s860_s10, 128  ;;  %s864_s12 = int_to_ptr.vmem [resolvable:$true] %s225_s12 }
  0x13   : > { %p641_p11 = scmp.ne.s32.totalorder %s860_s10, %s640_s14  ;;  %p873_p12 = pneg %p851_p8 }
  0x14   : > { %s645_s18 = scalar_lea.hbm %s1007_s1, 256  ;;  %p646_p1 = scmp.lt.u32.totalorder %s860_s10, %s1007_s1 }
  0x15   : > { %p643_p13 = pnand %p873_p12, %p641_p11  ;;  %p647_p2 = scmp.lt.u32.totalorder %s645_s18, %s640_s14 }
  0x16   : > { %p649_p4 = scmp.lt.u32.totalorder %s640_s14, %s860_s10 }
  0x17   : > { %p644_p0 = pneg %p643_p13  ;;  %p648_p3 = por %p647_p2, %p646_p1 }
  0x19   : > { %p650_p5 = por %p649_p4, %p648_p3 }
  0x1b   : > { %p651_p6 = pnand %p650_p5, %p644_p0 }
  0x1d   : > { %654 = shalt.err (!%p651_p6)
}
  0x1e   : > { %s655_s7 = scalar_lea.vmem %s864_s12, 128  ;;  %s770_s8 = smov [#allocation4]  }
  0x1f   : > { %p656_p11 = scmp.ne.s32.totalorder %s864_s12, %s655_s7  ;;  %s660_s9 = sshll.u32 %s770_s8, 4  ;;  %s661_s9 = int_to_ptr.vmem [resolvable:$false] %s660_s9 }
  0x20   : > { %s662_s11 = scalar_lea.vmem %s661_s9, 256  ;;  %p663_p10 = scmp.lt.s32.totalorder %s864_s12, %s661_s9 }
  0x21   : > { %p658_p13 = pnand %p656_p11, %p873_p12  ;;  %p664_p7 = scmp.lt.s32.totalorder %s662_s11, %s655_s7 }
  0x23   : > { %p659_p9 = pneg %p658_p13  ;;  %p665_p1 = por %p664_p7, %p663_p10 }
  0x25   : > { %p666_p2 = pnand %p665_p1, %p659_p9 }
  0x27   : > { %669 = shalt.err (!%p666_p2)
}
  0x28   : > { %595 = dma.hbm_to_vmem [thread:$0]  (!%p851_p8), %s860_s10, 128, %s864_s12, %s867_s13  }
  0x29   : > { %p1017_p0 = scmp.lt.s32.totalorder %s768_s21, 3  ;;  %p1018_p3 = scmp.ge.s32.totalorder %s768_s21, 1 }
  0x2a   : > { %s909_s18 = scalar_lea.hbm %s1006_s0, %s849_s30  ;;  %s200_s24 = scalar_lea.vmem [#allocation2], %s846_s29 }
  0x2b   : > { %p901_p4 = pnand %p1018_p3, %p1017_p0  ;;  %s207_s25 = sshll.u32 %s200_s24, 4  ;;  %s912_s25 = int_to_ptr.vmem [resolvable:$true] %s207_s25 }
  0x2c   : > { %s918_s21 = scalar_lea.hbm %s1008_s2, %s849_s30  ;;  %s197_s7 = scalar_lea.sflag [#allocation3], %s196_s28 }
  0x2d   : > { %s1019_s14 = scalar_select %p901_p4, 1, 0 }
  0x2e   : > { %s670_s8 = scalar_lea.hbm %s909_s18, 128  ;;  %s675_s16 = scalar_lea.hbm %s1006_s0, 256 }
  0x2f   : > { %p671_p7 = scmp.ne.s32.totalorder %s909_s18, %s670_s8  ;;  %p676_p5 = scmp.lt.u32.totalorder %s909_s18, %s1006_s0 }
  0x30   : > { %p677_p6 = scmp.lt.u32.totalorder %s675_s16, %s670_s8  ;;  %p679_p13 = scmp.lt.u32.totalorder %s670_s8, %s909_s18 }
  0x31   : > { %p673_p9 = pnand %p671_p7, %p873_p12 }
  0x32   : > { %p678_p11 = por %p677_p6, %p676_p5 }
  0x33   : > { %p674_p10 = pneg %p673_p9 }
  0x34   : > { %p680_p1 = por %p679_p13, %p678_p11 }
  0x36   : > { %p681_p2 = pnand %p680_p1, %p674_p10 }
  0x38   : > { %684 = shalt.err (!%p681_p2)
}
  0x39   : > { %s685_s28 = scalar_lea.vmem %s912_s25, 128  ;;  %s771_s30 = smov [#allocation2]  }
  0x3a   : > { %p686_p0 = scmp.ne.s32.totalorder %s912_s25, %s685_s28  ;;  %s690_s10 = sshll.u32 %s771_s30, 4  ;;  %s691_s10 = int_to_ptr.vmem [resolvable:$false] %s690_s10 }
  0x3b   : > { %s692_s12 = scalar_lea.vmem %s691_s10, 256  ;;  %p693_p9 = scmp.lt.s32.totalorder %s912_s25, %s691_s10 }
  0x3c   : > { %p688_p3 = pnand %p686_p0, %p873_p12  ;;  %p694_p4 = scmp.lt.s32.totalorder %s692_s12, %s685_s28 }
  0x3e   : > { %p689_p7 = pneg %p688_p3  ;;  %p695_p5 = por %p694_p4, %p693_p9 }
  0x40   : > { %p696_p6 = pnand %p695_p5, %p689_p7 }
  0x42   : > { %699 = shalt.err (!%p696_p6)
}
  0x43   : > { %592 = dma.hbm_to_vmem [thread:$0]  (!%p851_p8), %s909_s18, 128, %s912_s25, %s197_s7  }
  0x44   : > { %s236_s8 = scalar_lea.vmem [#allocation6], %s846_s29  ;;  %s700_s11 = scalar_lea.hbm %s918_s21, 128 }
  0x45   : > { %s243_s9 = sshll.u32 %s236_s8, 4  ;;  %p701_p10 = scmp.ne.s32.totalorder %s918_s21, %s700_s11  ;;  %s244_s9 = int_to_ptr.vmem [resolvable:$true] %s243_s9 }
  0x46   : > { %s705_s24 = scalar_lea.hbm %s1008_s2, 256  ;;  %p706_p13 = scmp.lt.u32.totalorder %s918_s21, %s1008_s2 }
  0x47   : > { %p703_p4 = pnand %p701_p10, %p873_p12  ;;  %p707_p1 = scmp.lt.u32.totalorder %s705_s24, %s700_s11 }
  0x48   : > { %p709_p0 = scmp.lt.u32.totalorder %s700_s11, %s918_s21 }
  0x49   : > { %p704_p11 = pneg %p703_p4  ;;  %p708_p2 = por %p707_p1, %p706_p13 }
  0x4b   : > { %p710_p3 = por %p709_p0, %p708_p2 }
  0x4d   : > { %p711_p7 = pnand %p710_p3, %p704_p11 }
  0x4f   : > { %714 = shalt.err (!%p711_p7)
}
  0x50   : > { %s715_s29 = scalar_lea.vmem %s244_s9, 128  ;;  %s772_s18 = smov [#allocation6]  }
  0x51   : > { %p716_p9 = scmp.ne.s32.totalorder %s244_s9, %s715_s29  ;;  %s720_s25 = sshll.u32 %s772_s18, 4  ;;  %s721_s25 = int_to_ptr.vmem [resolvable:$false] %s720_s25 }
  0x52   : > { %s722_s7 = scalar_lea.vmem %s721_s25, 256  ;;  %p723_p10 = scmp.lt.s32.totalorder %s244_s9, %s721_s25 }
  0x53   : > { %p718_p5 = pnand %p716_p9, %p873_p12  ;;  %p724_p4 = scmp.lt.s32.totalorder %s722_s7, %s715_s29 }
  0x55   : > { %p719_p6 = pneg %p718_p5  ;;  %p725_p8 = por %p724_p4, %p723_p10 }
  0x57   : > { %p726_p1 = pnand %p725_p8, %p719_p6 }
  0x59   : > { %729 = shalt.err (!%p726_p1)
}
  0x5a   : > { %p1020_p13 = scmp.ne.s32.totalorder %s1015_s6, 0  ;;  %p1021_p11 = scmp.ne.s32.totalorder %s1019_s14, 0 }
  0x5b   : > { %s254_s15 = sand.u32 (!%p1021_p11), 1, %s760_s19   ;;  %p1022_p12 = scmp.ne.s32.totalorder (!%p1021_p11), %s1014_s27, 0 }
  0x5c   : > { %598 = dma.hbm_to_vmem [thread:$0]  (!%p1020_p13), %s918_s21, 128, %s244_s9, %s867_s13  }
  0x5d   : > { %252 = sbr.rel (%p1021_p11) target bundleno = 284 (0x11c), region = 32  ;;  %s575_s10 = sshll.u32 (!%p1021_p11), %s254_s15, 3 }
  0x5e   : > { %s255_s12 = scalar_lea.sflag (!%p1021_p11), [#allocation3], %s254_s15  ;;  %s258_s8 = scalar_lea.vmem (!%p1021_p11), [#allocation2], %s575_s10 }
  0x64   : > { %747 = dma.done.wait (%p1022_p12), %s255_s12, 128  }
  0x65   : > { %749 = vsyncadd (%p1022_p12), %s255_s12, 4294967168  ;;  %s263_s6 = sand.u32 1, %s822_s22   ;;  %s267_s16 = scalar_lea.vmem [#allocation4], %s575_s10 }
  0x66   : > { %s264_s11 = scalar_lea.sflag [#allocation5], %s263_s6 }
  0x67   : > { %751 = dma.done.wait (%p1022_p12), %s264_s11, 256  }
  0x68   : > { %753 = vsyncadd (%p1022_p12), %s264_s11, 4294967040  ;;  %v332_v0 = vld [vmem:[%s258_s8] sm:$0xff]  ;;  %v333_v1 = vld [vmem:[%s267_s16] sm:$0xff]  ;;  %vm337_vm0 = vcmask 261120   ;;  %s276_s13 = scalar_lea.vmem [#allocation6], %s575_s10  ;;  %p320_p8 = scmp.lt.s32.totalorder %s822_s22, 1 }
  0x69   : > { %v334_v2 = vld [vmem:[%s276_s13] sm:$0xff]  ;;  %v335_v3 = vsub.f32 %v332_v0, %v333_v1  ;;  %vm359_vm1 = vcmask 7168  }
  0x6a   : > { %v336_v4 = vsub.f32 %v332_v0, %v334_v2  ;;  %s1028_s22 = smov (!%p320_p8, %s822_s22), 1 }
  0x6b   : > { %v338_v5 = vsel %vm337_vm0, %v335_v3, 0.0  ;;  %v341_v6 = vmul.f32 %v335_v3, %v335_v3  ;;  %s976_s27 = sshll.u32 %s1028_s22, 3 }
  0x6c   : > { %v348_v7 = vmul.f32 %v336_v4, %v336_v4  ;;  %339 = vadd.xlane.f32.xlu0 %v338_v5  ;;  %v345_v9 = vsel %vm337_vm0, %v336_v4, 0.0  ;;  %s323_s9 = scalar_lea.vmem %s1009_s3, %s976_s27  ;;  %s327_s24 = scalar_lea.vmem %s1010_s4, %s976_s27 }
  0x6d   : > { %v342_v8 = vsel %vm337_vm0, %v341_v6, 0.0  ;;  %s331_s29 = scalar_lea.vmem %s1011_s5, %s976_s27 }
  0x6e   : > { %343 = vadd.xlane.f32.xlu1 %v342_v8  ;;  %v349_v10 = vsel %vm337_vm0, %v348_v7, 0.0 }
  0x70   : > { %346 = vadd.xlane.f32.xlu0 %v345_v9 }
  0x72   : > { %350 = vadd.xlane.f32.xlu1 %v349_v10 }
  0xf9   : > { %v340_v11 = vpop.xlane.xlu0 %339 }
  0xfa   : > { %v369_v12 = vmul.f32 2e-06, %v340_v11 }
  0xfb   : > { %v344_v13 = vpop.xlane.xlu1 %343 }
  0xfc   : > { %632 = vrsqrt.f32 %v344_v13  ;;  %v370_v14 = vadd.f32 %v369_v12, %v344_v13  ;;  %vm354_vm2 = vcmp.eq.f32.partialorder %v344_v13, inf  ;;  %v357_v25 = vand.u32 2147483648, %v344_v13 }
  0xfd   : > { %v347_v15 = vpop.xlane.xlu0 %346  ;;  %vm356_vm3 = vcmp.eq.f32.partialorder %v344_v13, 0.0 }
  0xfe   : > { %v380_v16 = vmul.f32 2e-06, %v347_v15  ;;  %v371_v17 = vadd.f32 3.2e-11, %v370_v14 }
  0xff   : > { %v351_v18 = vpop.xlane.xlu1 %350 }
 0x100   : > { %634 = vrsqrt.f32 %v351_v18  ;;  %v372_v19 = vmax.f32 %v371_v17, 0.0  ;;  %v381_v20 = vadd.f32 %v380_v16, %v351_v18  ;;  %vm363_vm4 = vcmp.eq.f32.partialorder %v351_v18, inf }
 0x101   : > { %v366_v30 = vand.u32 2147483648, %v351_v18  ;;  %vm365_vm5 = vcmp.eq.f32.partialorder %v351_v18, 0.0 }
 0x102   : > { %636 = vrsqrt.f32 %v372_v19  ;;  %v382_v21 = vadd.f32 3.2e-11, %v381_v20  ;;  %vm375_vm6 = vcmp.eq.f32.partialorder %v372_v19, inf  ;;  %v378_v38 = vand.u32 2147483648, %v372_v19 }
 0x103   : > { %vm377_vm8 = vcmp.eq.f32.partialorder %v372_v19, 0.0 }
 0x104   : > { %v383_v23 = vmax.f32 %v382_v21, 0.0 }
 0x106   : > { %v633_v22 = vpop.eup %632  ;;  %638 = vrsqrt.f32 %v383_v23  ;;  %vm386_vm7 = vcmp.eq.f32.partialorder %v383_v23, inf  ;;  %v389_v39 = vand.u32 2147483648, %v383_v23  ;;  %vm388_vm9 = vcmp.eq.f32.partialorder %v383_v23, 0.0 }
 0x107   : > { %v353_v24 = vmul.f32 %v633_v22, %v344_v13 }
 0x109   : > { %v355_v26 = vsel %vm354_vm2, %v344_v13, %v353_v24 }
 0x10a   : > { %v635_v27 = vpop.eup %634  ;;  %v358_v28 = vsel %vm356_vm3, %v357_v25, %v355_v26 }
 0x10b   : > { %360 = vst.msk [vmem:[%s323_s9] sm:$0xff] %vm359_vm1, %v358_v28  ;;  %v362_v29 = vmul.f32 %v635_v27, %v351_v18 }
 0x10c   : > { %v637_v31 = vpop.eup %636 }
 0x10d   : > { %v364_v32 = vsel %vm363_vm4, %v351_v18, %v362_v29  ;;  %v374_v34 = vmul.f32 %v637_v31, %v372_v19 }
 0x10e   : > { %v367_v33 = vsel %vm365_vm5, %v366_v30, %v364_v32 }
 0x10f   : > { %368 = vst.msk [vmem:[%s327_s24] sm:$0xff] %vm359_vm1, %v367_v33  ;;  %v376_v36 = vsel %vm375_vm6, %v372_v19, %v374_v34 }
 0x110   : > { %v639_v35 = vpop.eup %638  ;;  %v379_v41 = vsel %vm377_vm8, %v378_v38, %v376_v36 }
 0x111   : > { %v385_v37 = vmul.f32 %v639_v35, %v383_v23 }
 0x113   : > { %v387_v40 = vsel %vm386_vm7, %v383_v23, %v385_v37 }
 0x114   : > { %v390_v42 = vsel %vm388_vm9, %v389_v39, %v387_v40 }
 0x115   : > { %v391_v43 = vsub.f32 %v379_v41, %v390_v42 }
 0x117   : > { %v392_v44 = vadd.f32 1.0, %v391_v43 }
 0x119   : > { %v393_v45 = vmax.f32 %v392_v44, 0.0 }
 0x11b   : > { %394 = vst.msk [vmem:[%s331_s29] sm:$0xff] %vm359_vm1, %v393_v45 }
 0x11c PF: > { %p19_p2 = scmp.ge.s32.totalorder %s825_s23, 4   ;;  %s1023_s18 = smov %s760_s19 }
 0x11d   : > { %s1024_s19 = smov %s764_s20  ;;  %s1025_s20 = smov %s835_s26 }
 0x11e   : > { %s1026_s21 = smov %s825_s23  ;;  %21 = sbr.rel (!%p19_p2) target bundleno = 5 (0x5), region = 120 }
 0x125   :  { %442 = vsyncpa [#allocation3], 1 }
 0x126   :  { %444 = vsyncpa [#allocation3 + $0x1], 1 }
 0x127   :  { %445 = vsyncpa [#allocation5], 1 }
 0x128   :  { %447 = vsyncpa [#allocation5 + $0x1], 1 }

// kernel: _forward_impl.3
= control target key start
LH: loop header
LB: loop body
LE: loop exit
PB: predicated region body
PF: predicated region fallthrough
CT: control target
= control target key end

     0   :  { %13 = vsyncpa [#allocation4], 0  ;;  %s963_s0 = inlined_call_operand.vmem [shape: f32[2], index: 0, kind: input, shape index: {}]   ;;  %s964_s1 = inlined_call_operand.vmem [shape: f32[16,1], index: 1, kind: input, shape index: {}]   ;;  %s965_s2 = inlined_call_operand.vmem [shape: f32[16,1], index: 2, kind: input, shape index: {}]   ;;  %s966_s3 = inlined_call_operand.vmem [shape: f32[16,1], index: 3, kind: input, shape index: {}]   ;;  %s967_s4 = inlined_call_operand.hbm [shape: f32[1,1], index: 4, kind: output, shape index: {0}]   ;;  %s968_s5 = inlined_call_operand.hbm [shape: f32[1,1], index: 5, kind: output, shape index: {1}]   ;;  %s969_s6 = inlined_call_operand.hbm [shape: f32[1,1], index: 6, kind: output, shape index: {2}]   ;;  %s970_s7 = inlined_call_operand.hbm [shape: f32[1,1], index: 7, kind: output, shape index: {3}]  }
   0x1   :  { %14 = vsyncpa [#allocation3], 0 }
   0x2   :  { %15 = vsyncpa [#allocation7], 0 }
   0x3   :  { %16 = vsyncpa [#allocation10], 0  ;;  %s822_s24 = smov 0  }
   0x4 LB: > { %s828_s25 = sadd.s32 4294967295, %s773_s24   ;;  %p551_p0 = scmp.ge.s32.totalorder %s773_s24, 1  ;;  %s773_s24 = sphi %s822_s24, %s22_s24  }
   0x5   : > { %p210_p1 = scmp.lt.s32.totalorder %s773_s24, 3  ;;  %s223_s28 = sshll.u32 %s963_s0, 4  ;;  %s224_s28 = int_to_ptr.vmem [resolvable:$true] %s223_s28 }
   0x6   : > { %p605_p4 = scmp.eq.s32.totalorder %s828_s25, 0  ;;  %s632_s30 = scalar_lea.vmem %s224_s28, 16 }
   0x7   : > { %p836_p3 = pnand %p551_p0, %p210_p1  ;;  %p633_p7 = scmp.ne.s32.totalorder %s224_s28, %s632_s30 }
   0x8   : > { %p640_p11 = scmp.lt.s32.totalorder %s224_s28, %s224_s28  ;;  %p641_p12 = scmp.lt.s32.totalorder %s632_s30, %s632_s30 }
   0x9   : > { %p601_p5 = pneg %p836_p3 }
   0xa   : > { %p642_p13 = por %p641_p12, %p640_p11 }
   0xb   : > { %p602_p6 = pnand %p605_p4, %p601_p5 }
   0xd   : > { %p634_p8 = pneg %p602_p6 }
   0xf   : > { %p635_p9 = pnand %p634_p8, %p633_p7 }
  0x11   : > { %p636_p10 = pneg %p635_p9 }
  0x13   : > { %p643_p2 = pnand %p642_p13, %p636_p10 }
  0x15   : > { %646 = shalt.err (!%p643_p2)
}
  0x16   : > { %s775_s8 = smov [#allocation2]   ;;  %257 = sbr.rel (%p836_p3) target bundleno = 386 (0x182), region = 36 }
  0x17   : > { %604 = dma.vmem_to_smem (!%p602_p6), %s224_s28, 16, %s775_s8, [#allocation4]  }
  0x1d   : > { %756 = dma.done.wait (%p605_p4), [#allocation4], 16  }
  0x1e   : > { %758 = vsyncadd (%p605_p4), [#allocation4], 4294967280 }
  0x1f   : > { %263 = sfence }
  0x20   : > { %p292_p0 = scmp.lt.s32.totalorder %s828_s25, 1  ;;  %p972_p1 = scmp.ne.s32.totalorder %s828_s25, 0 }
  0x21   : > { %vm308_vm0 = vcmask (!%p972_p1), 0   ;;  %v776_v0 = vmov (!%p972_p1), 0.0  }
  0x22   : > { %s293_s9 = scalar_select %p292_p0, %s828_s25, 1 }
  0x23   : > { %307 = sbr.rel (%p972_p1) target bundleno = 42 (0x2a), region = 44  ;;  %309 = vst.msk [vmem:[#allocation5] sm:$0x1] (!%p972_p1), %vm308_vm0, %v776_v0  ;;  %310 = vst.msk [vmem:[#allocation6] sm:$0x1] (!%p972_p1), %vm308_vm0, %v776_v0 }
  0x24   : > { %s556_s10 = sshll.u32 %s293_s9, 3  ;;  %311 = vst.msk [vmem:[#allocation8] sm:$0x1] (!%p972_p1), %vm308_vm0, %v776_v0  ;;  %312 = vst.msk [vmem:[#allocation9] sm:$0x1] (!%p972_p1), %vm308_vm0, %v776_v0 }
  0x25   : > { %s295_s13 = scalar_lea.vmem %s964_s1, %s556_s10  ;;  %s299_s16 = scalar_lea.vmem %s965_s2, %s556_s10 }
  0x26   : > { %s303_s19 = scalar_lea.vmem %s966_s3, %s556_s10 }
  0x2a PF: > { %s560_s20 = sld [smem:[#allocation2 + $0x1]]  ;;  %s561_s21 = sshll.u32 %s828_s25, 3  ;;  %v318_v1 = vlaneseq  ;;  %v316_v4 = vld [vmem:[%s299_s16] sm:$0xff]  ;;  %vm336_vm3 = vcmask 7168   ;;  %v777_v10 = vmov 0.0   ;;  %vm349_vm8 = vcmask 0  }
  0x2b   : > { %v320_v2 = vstv %s561_s21  ;;  %s313_s22 = sld [smem:[#allocation2]]  ;;  %v315_v6 = vld [vmem:[%s295_s13] sm:$0xff]  ;;  %p562_p2 = scmp.ne.s32.totalorder %s828_s25, 1 }
  0x2c   : > { %v319_v3 = vshrl.u32 %v318_v1, 7  ;;  %v333_v9 = vld [vmem:[%s303_s19] sm:$0xff] }
  0x2d   : > { %v335_v47 = vld [vmem:[#allocation5] sm:$0x1]  ;;  %v351_v50 = vld [vmem:[#allocation6] sm:$0x1]  ;;  %v365_v51 = vld [vmem:[#allocation8] sm:$0x1] }
  0x2e   : > { %v321_v5 = vadd.s32 %v320_v2, %v319_v3  ;;  %v379_v53 = vld [vmem:[#allocation9] sm:$0x1] }
  0x30   : > { %vm322_vm1 = vcmp.lt.s32.totalorder %v321_v5, 16  ;;  %v326_v7 = vstv %s560_s20 }
  0x31   : > { %vm327_vm2 = vcmp.le.f32.partialorder %v316_v4, %v326_v7  ;;  %v323_v8 = vstv %s313_s22 }
  0x32   : > { %vm328_vm4 = vmand %vm322_vm1, %vm327_vm2  ;;  %vm324_vm5 = vcmp.ge.f32.partialorder %v315_v6, %v323_v8 }
  0x33   : > { %v331_v11 = vsel %vm328_vm4, 1.0, %v777_v10  ;;  %vm325_vm6 = vmand %vm322_vm1, %vm324_vm5 }
  0x34   : > { %v366_v12 = vsel %vm336_vm3, %v331_v11, 0.0  ;;  %vm329_vm7 = vmand %vm325_vm6, %vm328_vm4  ;;  %v330_v15 = vsel %vm325_vm6, 1.0, %v777_v10 }
  0x35   : > { %367 = vadd.xlane.f32.xlu1 %v366_v12  ;;  %v334_v13 = vsel %vm329_vm7, %v333_v9, 0.0  ;;  %v332_v14 = vsel %vm329_vm7, 1.0, %v777_v10  ;;  %v352_v18 = vsel %vm336_vm3, %v330_v15, 0.0 }
  0x36   : > { %v337_v16 = vsel %vm336_vm3, %v334_v13, 0.0  ;;  %v380_v17 = vsel %vm336_vm3, %v332_v14, 0.0 }
  0x37   : > { %338 = vadd.xlane.f32.xlu0 %v337_v16 }
  0x39   : > { %381 = vadd.xlane.f32.xlu1 %v380_v17 }
  0x3b   : > { %353 = vadd.xlane.f32.xlu0 %v352_v18 }
  0xc2   : > { %v368_v19 = vpop.xlane.xlu1 %367 }
  0xc3   : > { %v369_v20 = vrot.slane %v368_v19, 4 }
  0xc4   : > { %v339_v21 = vpop.xlane.xlu0 %338 }
  0xc5   : > { %v370_v22 = vadd.f32 %v369_v20, %v368_v19  ;;  %v340_v23 = vrot.slane %v339_v21, 4 }
  0xc6   : > { %v382_v24 = vpop.xlane.xlu1 %381 }
  0xc7   : > { %v341_v25 = vadd.f32 %v340_v23, %v339_v21  ;;  %v383_v26 = vrot.slane %v382_v24, 4  ;;  %v371_v27 = vrot.slane %v370_v22, 2 }
  0xc8   : > { %v354_v28 = vpop.xlane.xlu0 %353 }
  0xc9   : > { %v342_v29 = vrot.slane %v341_v25, 2  ;;  %v384_v30 = vadd.f32 %v383_v26, %v382_v24  ;;  %v355_v31 = vrot.slane %v354_v28, 4  ;;  %v372_v35 = vadd.f32 %v371_v27, %v370_v22 }
  0xcb   : > { %v385_v32 = vrot.slane %v384_v30, 2  ;;  %v356_v33 = vadd.f32 %v355_v31, %v354_v28  ;;  %v343_v34 = vadd.f32 %v342_v29, %v341_v25  ;;  %v373_v42 = vrot.slane %v372_v35, 1 }
  0xcd   : > { %v386_v36 = vadd.f32 %v385_v32, %v384_v30  ;;  %v357_v37 = vrot.slane %v356_v33, 2  ;;  %v344_v38 = vrot.slane %v343_v34, 1  ;;  %v374_v46 = vadd.f32 %v373_v42, %v372_v35 }
  0xcf   : > { %v358_v39 = vadd.f32 %v357_v37, %v356_v33  ;;  %v345_v40 = vadd.f32 %v344_v38, %v343_v34  ;;  %v387_v41 = vrot.slane %v386_v36, 1 }
  0xd1   : > { %573 = vpush %v345_v40  ;;  %v359_v43 = vrot.slane %v358_v39, 1  ;;  %v388_v45 = vadd.f32 %v387_v41, %v386_v36 }
  0xd3   : > { %v360_v44 = vadd.f32 %v359_v43, %v358_v39 }
  0xd5   : > { %575 = vpush %v360_v44 }
  0xd6   : > { %577 = vpush %v374_v46 }
  0xd7   : > { %579 = vpush %v388_v45 }
 0x102   : > { %s574_s23 = spop %573 }
 0x103   : > { %v347_v48 = vstv %s574_s23 }
 0x104   : > { %v348_v49 = vadd.f32 %v347_v48, %v335_v47 }
 0x106   : > { %350 = vst.msk [vmem:[#allocation5] sm:$0x1] %vm349_vm8, %v348_v49  ;;  %s576_s26 = spop %575  ;;  %396 = sbr.rel (%p562_p2) target bundleno = 292 (0x124), region = 48 }
 0x107   : > { %v362_v52 = vstv %s576_s26  ;;  %s578_s27 = spop %577 }
 0x108   : > { %v363_v54 = vadd.f32 %v362_v52, %v351_v50  ;;  %v376_v55 = vstv %s578_s27  ;;  %s580_s28 = spop %579 }
 0x109   : > { %v377_v56 = vadd.f32 %v376_v55, %v365_v51  ;;  %v390_v57 = vstv %s580_s28 }
 0x10a   : > { %364 = vst.msk [vmem:[#allocation6] sm:$0x1] %vm349_vm8, %v363_v54  ;;  %v391_v58 = vadd.f32 %v390_v57, %v379_v53 }
 0x10b   : > { %378 = vst.msk [vmem:[#allocation8] sm:$0x1] %vm349_vm8, %v377_v56 }
 0x10c   : > { %392 = vst.msk [vmem:[#allocation9] sm:$0x1] %vm349_vm8, %v391_v58 }
 0x10d   : > { %v397_v61 = vld [vmem:[#allocation5] sm:$0x1] }
 0x113   : > { %v398_v59 = vld [vmem:[#allocation9] sm:$0x1] }
 0x114   : > { %v399_v60 = vadd.f32 1e-08, %v398_v59 }
 0x116   : > { %630 = vrcp.f32 %v399_v60 }
 0x120   : > { %v631_v62 = vpop.eup %630 }
 0x121   : > { %v401_v63 = vmul.f32 %v631_v62, %v397_v61 }
 0x123   : > { %402 = vst.msk [vmem:[#allocation5] sm:$0x1] %vm349_vm8, %v401_v63 }
 0x124 PF: > { %p607_p3 = scmp.eq.s32.totalorder %s828_s25, 1  ;;  %s778_s29 = smov [#allocation6]  }
 0x125   : > { %s421_s30 = sshll.u32 %s778_s29, 4  ;;  %s779_s8 = smov [#allocation5]   ;;  %s422_s30 = int_to_ptr.vmem [resolvable:$true] %s421_s30 }
 0x126   : > { %s410_s9 = sshll.u32 %s779_s8, 4  ;;  %s647_s10 = scalar_lea.vmem %s422_s30, 16  ;;  %s411_s9 = int_to_ptr.vmem [resolvable:$true] %s410_s9 }
 0x127   : > { %p648_p4 = scmp.ne.s32.totalorder %s422_s30, %s647_s10  ;;  %s653_s11 = scalar_lea.vmem %s422_s30, 32 }
 0x128   : > { %p654_p7 = scmp.lt.s32.totalorder %s422_s30, %s422_s30  ;;  %p655_p8 = scmp.lt.s32.totalorder %s653_s11, %s647_s10 }
 0x129   : > { %p649_p5 = pnand %p648_p4, %p607_p3 }
 0x12a   : > { %p656_p9 = por %p655_p8, %p654_p7 }
 0x12b   : > { %p650_p6 = pneg %p649_p5 }
 0x12d   : > { %p657_p10 = pnand %p656_p9, %p650_p6 }
 0x12f   : > { %660 = shalt.err (!%p657_p10)
}
 0x130   : > { %s661_s14 = scalar_lea.hbm %s968_s5, 16 }
 0x131   : > { %p662_p11 = scmp.ne.s32.totalorder %s968_s5, %s661_s14  ;;  %p667_p0 = scmp.lt.u32.totalorder %s661_s14, %s968_s5 }
 0x133   : > { %p663_p12 = pnand %p662_p11, %p607_p3 }
 0x135   : > { %p664_p13 = pneg %p663_p12 }
 0x137   : > { %p669_p1 = pnand %p667_p0, %p664_p13 }
 0x139   : > { %672 = shalt.err (!%p669_p1)
}
 0x13a   : > { %588 = dma.vmem_to_hbm [thread:$0]  (%p607_p3), %s422_s30, 16, %s968_s5, [#allocation7]  }
 0x13b   : > { %s673_s21 = scalar_lea.vmem %s411_s9, 16  ;;  %s679_s22 = scalar_lea.vmem %s411_s9, 32 }
 0x13c   : > { %p674_p2 = scmp.ne.s32.totalorder %s411_s9, %s673_s21  ;;  %p680_p6 = scmp.lt.s32.totalorder %s411_s9, %s411_s9 }
 0x13d   : > { %p681_p7 = scmp.lt.s32.totalorder %s679_s22, %s673_s21 }
 0x13e   : > { %p675_p4 = pnand %p674_p2, %p607_p3 }
 0x13f   : > { %p682_p8 = por %p681_p7, %p680_p6 }
 0x140   : > { %p676_p5 = pneg %p675_p4 }
 0x142   : > { %p683_p9 = pnand %p682_p8, %p676_p5 }
 0x144   : > { %686 = shalt.err (!%p683_p9)
}
 0x145   : > { %s687_s27 = scalar_lea.hbm %s967_s4, 16 }
 0x146   : > { %p688_p10 = scmp.ne.s32.totalorder %s967_s4, %s687_s27  ;;  %p693_p13 = scmp.lt.u32.totalorder %s687_s27, %s967_s4 }
 0x148   : > { %p689_p11 = pnand %p688_p10, %p607_p3 }
 0x14a   : > { %p690_p12 = pneg %p689_p11 }
 0x14c   : > { %p695_p0 = pnand %p693_p13, %p690_p12 }
 0x14e   : > { %698 = shalt.err (!%p695_p0)
}
 0x14f   : > { %586 = dma.vmem_to_hbm [thread:$0]  (%p607_p3), %s411_s9, 16, %s967_s4, [#allocation3]  }
 0x150   : > { %s780_s12 = smov [#allocation8]   ;;  %s781_s14 = smov [#allocation9]  }
 0x151   : > { %s432_s13 = sshll.u32 %s780_s12, 4  ;;  %s443_s15 = sshll.u32 %s781_s14, 4  ;;  %s433_s13 = int_to_ptr.vmem [resolvable:$true] %s432_s13  ;;  %s444_s15 = int_to_ptr.vmem [resolvable:$true] %s443_s15 }
 0x152   : > { %s699_s16 = scalar_lea.vmem %s433_s13, 16  ;;  %s705_s17 = scalar_lea.vmem %s433_s13, 32 }
 0x153   : > { %p700_p1 = scmp.ne.s32.totalorder %s433_s13, %s699_s16  ;;  %p706_p5 = scmp.lt.s32.totalorder %s433_s13, %s433_s13 }
 0x154   : > { %p707_p6 = scmp.lt.s32.totalorder %s705_s17, %s699_s16 }
 0x155   : > { %p701_p2 = pnand %p700_p1, %p607_p3 }
 0x156   : > { %p708_p7 = por %p707_p6, %p706_p5 }
 0x157   : > { %p702_p4 = pneg %p701_p2 }
 0x159   : > { %p709_p8 = pnand %p708_p7, %p702_p4 }
 0x15b   : > { %712 = shalt.err (!%p709_p8)
}
 0x15c   : > { %s713_s9 = scalar_lea.hbm %s969_s6, 16 }
 0x15d   : > { %p714_p9 = scmp.ne.s32.totalorder %s969_s6, %s713_s9  ;;  %p719_p12 = scmp.lt.u32.totalorder %s713_s9, %s969_s6 }
 0x15f   : > { %p715_p10 = pnand %p714_p9, %p607_p3 }
 0x161   : > { %p716_p11 = pneg %p715_p10 }
 0x163   : > { %p721_p13 = pnand %p719_p12, %p716_p11 }
 0x165   : > { %724 = shalt.err (!%p721_p13)
}
 0x166   : > { %590 = dma.vmem_to_hbm [thread:$0]  (%p607_p3), %s433_s13, 16, %s969_s6, [#allocation7]  }
 0x167   : > { %s725_s28 = scalar_lea.vmem %s444_s15, 16  ;;  %s731_s29 = scalar_lea.vmem %s444_s15, 32 }
 0x168   : > { %p726_p0 = scmp.ne.s32.totalorder %s444_s15, %s725_s28  ;;  %p732_p4 = scmp.lt.s32.totalorder %s444_s15, %s444_s15 }
 0x169   : > { %p733_p5 = scmp.lt.s32.totalorder %s731_s29, %s725_s28 }
 0x16a   : > { %p727_p1 = pnand %p726_p0, %p607_p3 }
 0x16b   : > { %p734_p6 = por %p733_p5, %p732_p4 }
 0x16c   : > { %p728_p2 = pneg %p727_p1 }
 0x16e   : > { %p735_p7 = pnand %p734_p6, %p728_p2 }
 0x170   : > { %738 = shalt.err (!%p735_p7)
}
 0x171   : > { %s739_s10 = scalar_lea.hbm %s970_s7, 16 }
 0x172   : > { %p740_p8 = scmp.ne.s32.totalorder %s970_s7, %s739_s10  ;;  %p745_p11 = scmp.lt.u32.totalorder %s739_s10, %s970_s7 }
 0x174   : > { %p741_p9 = pnand %p740_p8, %p607_p3 }
 0x176   : > { %p742_p10 = pneg %p741_p9 }
 0x178   : > { %p747_p12 = pnand %p745_p11, %p742_p10 }
 0x17a   : > { %750 = shalt.err (!%p747_p12)
}
 0x17b   : > { %592 = dma.vmem_to_hbm [thread:$0]  (%p607_p3), %s444_s15, 16, %s970_s7, [#allocation10]  }
 0x17c   : > { %760 = dma.done.wait (%p607_p3), [#allocation3], 16  }
 0x17d   : > { %762 = vsyncadd (%p607_p3), [#allocation3], 4294967280 }
 0x17e   : > { %764 = dma.done.wait (%p607_p3), [#allocation7], 32  }
 0x17f   : > { %766 = vsyncadd (%p607_p3), [#allocation7], 4294967264 }
 0x180   : > { %768 = dma.done.wait (%p607_p3), [#allocation10], 16  }
 0x181   : > { %770 = vsyncadd (%p607_p3), [#allocation10], 4294967280 }
 0x182 PF: > { %s22_s24 = sadd.s32 1, %s773_s24  }
 0x183   : > { %p19_p13 = scmp.ge.s32.totalorder %s22_s24, 4  }
 0x185   :  { %21 = sbr.rel (!%p19_p13) target bundleno = 4 (0x4), region = 106 }
 0x18c   :  { %468 = vsyncpa [#allocation3], 1 }
 0x18d   :  { %470 = vsyncpa [#allocation3 + $0x1], 1 }
 0x18e   :  { %471 = vsyncpa [#allocation7], 1 }
 0x18f   :  { %472 = vsyncpa [#allocation10], 1 }
 0x190   :  { %473 = vsyncpa [#allocation4], 1 }
 0x191   :  { %475 = vsyncpa [#allocation4 + $0x1], 1 }

</bundles_post_ra>
